<compile_context>
chip_gen: v6e
topology: v6e:2x2x1
jax: 0.10.0
libtpu: 0.0.40
codegen_flags: <defaults>
</compile_context>

<pallas_src>
import math
import functools

import jax
import jax.numpy as jnp
from jax import lax
from jax.experimental import pallas as pl
from jax.experimental.pallas import tpu as pltpu

GN_EPS = 1e-5                      # torch.nn.GroupNorm default
_INV_SQRT2 = 1.0 / math.sqrt(2.0)
_LANE = 128


def _vmem_capacity_bytes():
    try:
        info = pltpu.get_tpu_info()
        cap = getattr(info, "vmem_capacity_bytes", None)
        if cap:
            return int(cap)
    except Exception:
        pass
    return 64 * 1024 * 1024        # conservative default (v7x per-TensorCore VMEM)


def _conv1d_gnorm_kernel(x_ref, w_ref, b_ref, g_ref, beta_ref, o_ref, col_ref, *,
                         bt, k_taps, c_in, l_out, l_out_p):
    """One grid step = `bt` batch rows.

    x_ref    : (bt, C_in_eff, L_x)        bf16, L_x >= k_taps-1+l_out_p, zero padded
    w_ref    : (C_out, k_taps*C_in_eff)   bf16, tap-major / channel-minor layout
    b_ref    : (C_out, 1)                 f32  conv bias
    g_ref    : (C_out, 1)                 f32  GroupNorm gamma
    beta_ref : (C_out, 1)                 f32  GroupNorm beta
    o_ref    : (bt, C_out, l_out_p)            lane-dense output (l_out_p % 128 == 0)
    col_ref  : (k_taps*C_in_eff, l_out_p) bf16 VMEM im2col scratch
    """
    # Invariant operands: loaded once per grid step, hoisted out of the row loop.
    w2 = w_ref[...]
    bias = b_ref[...]
    gamma = g_ref[...]
    beta = beta_ref[...]

    c_out = o_ref.shape[1]
    n = float(c_out * l_out)

    if l_out_p != l_out:
        lane = lax.broadcasted_iota(jnp.int32, (c_out, l_out_p), 1)
        valid = (lane < l_out).astype(jnp.float32)     # mask for padded lanes
    else:
        valid = None

    def row_body(b, carry):
        # ---- im2col: stack the K statically shifted slices along sublanes ----
        row = x_ref[b]                                  # (C_in_eff, L_x) bf16, one load
        for k in range(k_taps):                         # static, small tap count
            col_ref[pl.ds(k * c_in, c_in), :] = row[:, k:k + l_out_p]

        # ---- Conv1d: one MXU matmul (contraction depth K*C_in), f32 accumulate ----
        y = jnp.dot(w2, col_ref[...], preferred_element_type=jnp.float32) + bias
        if valid is not None:
            y = y * valid                               # zero pad lanes for the stats

        # ---- GroupNorm(num_groups=1): one-pass stats over the real elements ----
        s1 = jnp.sum(y)
        s2 = jnp.sum(y * y)
        mean = s1 / n
        var = jnp.maximum(s2 / n - mean * mean, 0.0)    # clamp against cancellation
        y_hat = (y - mean) * lax.rsqrt(var + GN_EPS)
        y_aff = y_hat * gamma + beta                    # per-channel affine

        # ---- GELU (exact erf; matches torch.nn.GELU() default) ----
        out = 0.5 * y_aff * (1.0 + lax.erf(y_aff * _INV_SQRT2))

        o_ref[b] = out.astype(o_ref.dtype)
        return carry

    lax.fori_loop(0, bt, row_body, 0, unroll=False)


@functools.partial(jax.jit, static_argnames=("stride", "padding", "batch_tile"))
def conv1d_gnorm(x, conv_w, conv_b, gn_w, gn_b, *, stride=1, padding=0, batch_tile=8):
    """x: (B, C_in, L); conv_w: (C_out, C_in, K); conv_b/gn_w/gn_b: (C_out,).

    Returns (B, C_out, L_out) in PyTorch NCL layout, same dtype as x.
    """
    B, C_in, L = x.shape
    C_out, _, K = conv_w.shape
    s = int(stride)
    L_pad = L + 2 * padding
    L_out = (L_pad - K) // s + 1
    L_out_p = -(-L_out // _LANE) * _LANE                # lane-dense output extent

    # stride > 1: polyphase decomposition (fold stride into channels) so the
    # kernel is always a dense, stride-1 conv with C_in_eff = C_in*s, K_eff = ceil(K/s).
    K_eff = -(-K // s)
    C_in_eff = C_in * s

    xb = x.astype(jnp.bfloat16)
    if s == 1:
        L_x = max(K_eff - 1 + L_out_p, L_pad)
        xp = jnp.pad(xb, ((0, 0), (0, 0), (padding, padding + (L_x - L_pad))))
    else:
        M0 = -(-L_pad // s)
        L_x = max(K_eff - 1 + L_out_p, M0)
        xp = jnp.pad(xb, ((0, 0), (0, 0), (padding, padding + (M0 * s - L_pad))))
        # xph[b, c_in*s + r, m] = x_pad[b, c_in, m*s + r]
        xp = xp.reshape(B, C_in, M0, s).transpose(0, 1, 3, 2).reshape(B, C_in_eff, M0)
        xp = jnp.pad(xp, ((0, 0), (0, 0), (0, L_x - M0)))

    wb = conv_w.astype(jnp.bfloat16)
    if K_eff * s != K:
        wb = jnp.pad(wb, ((0, 0), (0, 0), (0, K_eff * s - K)))
    # w2[c_out, q*C_in_eff + c_in*s + r] = w[c_out, c_in, q*s + r]  (tap-major, channel-minor)
    w2 = wb.reshape(C_out, C_in, K_eff, s).transpose(0, 2, 1, 3).reshape(
        C_out, K_eff * C_in_eff)

    b2 = conv_b.astype(jnp.float32).reshape(C_out, 1)
    g2 = gn_w.astype(jnp.float32).reshape(C_out, 1)
    be2 = gn_b.astype(jnp.float32).reshape(C_out, 1)

    out_itemsize = jnp.dtype(x.dtype).itemsize

    # Batch tile selection: >= 2 grid steps when possible (megacore / pipeline
    # overlap), then shrink until the double-buffered blocks fit the chip's VMEM.
    cap = _vmem_capacity_bytes()
    budget = max(16 * 1024 * 1024, cap - 8 * 1024 * 1024)

    def _blk_bytes(bt):
        x_blk = bt * C_in_eff * L_x * 2                     # bf16 input block
        o_blk = bt * C_out * L_out_p * out_itemsize         # output block
        w_blk = C_out * K_eff * C_in_eff * 2                # weights
        p_blk = 3 * C_out * 4                               # bias/gamma/beta
        col = K_eff * C_in_eff * L_out_p * 2                # im2col scratch
        interm = 6 * C_out * L_out_p * 4                    # per-row f32 temporaries
        return 2 * (x_blk + o_blk + w_blk + p_blk) + col + interm

    bt = max(1, min(batch_tile, B))
    if B >= 2:
        bt = min(bt, (B + 1) // 2)                          # at least two grid steps
    while bt > 1 and _blk_bytes(bt) > budget:
        bt -= 1
    n_blk = -(-B // bt)
    B_pad = n_blk * bt
    if B_pad > B:
        # GroupNorm is per batch row, so padded rows cannot pollute real rows.
        xp = jnp.pad(xp, ((0, B_pad - B), (0, 0), (0, 0)))

    vmem_limit = int(min(budget, max(32 * 1024 * 1024, 2 * _blk_bytes(bt))))

    kern = functools.partial(_conv1d_gnorm_kernel, bt=bt, k_taps=K_eff,
                             c_in=C_in_eff, l_out=L_out, l_out_p=L_out_p)

    cost = pl.CostEstimate(
        flops=2 * B_pad * L_out * K_eff * C_in_eff * C_out,
        transcendentals=2 * B_pad * C_out * L_out_p,        # erf + rsqrt per element
        bytes_accessed=(xp.size * 2 + w2.size * 2 + 3 * C_out * 4
                        + B_pad * C_out * L_out_p * out_itemsize),
    )

    out = pl.pallas_call(
        kern,
        out_shape=jax.ShapeDtypeStruct((B_pad, C_out, L_out_p), x.dtype),
        grid_spec=pltpu.PrefetchScalarGridSpec(
            num_scalar_prefetch=0,
            grid=(n_blk,),
            in_specs=[
                pl.BlockSpec((bt, C_in_eff, L_x), lambda i: (i, 0, 0)),
                pl.BlockSpec((C_out, K_eff * C_in_eff), lambda i: (0, 0)),
                pl.BlockSpec((C_out, 1), lambda i: (0, 0)),
                pl.BlockSpec((C_out, 1), lambda i: (0, 0)),
                pl.BlockSpec((C_out, 1), lambda i: (0, 0)),
            ],
            out_specs=pl.BlockSpec((bt, C_out, L_out_p), lambda i: (i, 0, 0)),
            scratch_shapes=[pltpu.VMEM((K_eff * C_in_eff, L_out_p), jnp.bfloat16)],
        ),
        compiler_params=pltpu.CompilerParams(
            dimension_semantics=("parallel",),
            vmem_limit_bytes=vmem_limit,
        ),
        cost_estimate=cost,
    )(xp, w2, b2, g2, be2)

    return out[:B, :, :L_out]                               # (B, C_out, L_out)


def _reference(x, conv_w, conv_b, gn_w, gn_b, *, stride, padding):
    # Pure-JAX reference. Inputs rounded to bf16 to match the kernel's MXU operand
    # precision (accumulation stays f32), so tolerances stay tight.
    xb = x.astype(jnp.bfloat16).astype(jnp.float32)
    wb = conv_w.astype(jnp.bfloat16).astype(jnp.float32)
    y = lax.conv_general_dilated(
        xb, wb, window_strides=(stride,), padding=[(padding, padding)],
        dimension_numbers=("NCH", "OIH", "NCH"))
    y = y + conv_b[None, :, None]
    mean = jnp.mean(y, axis=(1, 2), keepdims=True)
    var = jnp.var(y, axis=(1, 2), keepdims=True)
    y = (y - mean) * lax.rsqrt(var + GN_EPS)
    y = y * gn_w[None, :, None] + gn_b[None, :, None]
    return jax.nn.gelu(y, approximate=False)


if __name__ == "__main__":
    # Module config (small shapes consistent with Conv1dGNorm forward)
    B, C_in, C_out, L = 2, 4, 8, 16
    K, stride, padding = 3, 1, 1

    key = jax.random.PRNGKey(0)
    kx, kw, kb, kg, kbe = jax.random.split(key, 5)

    x = jax.random.normal(kx, (B, C_in, L), dtype=jnp.float32)

    # Deterministic synthetic params (Conv1d-like init bounds; GN affine perturbed).
    fan_in = C_in * K
    bound = 1.0 / math.sqrt(fan_in)
    conv_w = jax.random.uniform(kw, (C_out, C_in, K), jnp.float32, -bound, bound)
    conv_b = jax.random.uniform(kb, (C_out,), jnp.float32, -bound, bound)
    gn_w = 1.0 + 0.1 * jax.random.normal(kg, (C_out,), jnp.float32)
    gn_b = 0.1 * jax.random.normal(kbe, (C_out,), jnp.float32)

    out = conv1d_gnorm(x, conv_w, conv_b, gn_w, gn_b, stride=stride, padding=padding)
    out = jax.block_until_ready(out)

    ref = _reference(x, conv_w, conv_b, gn_w, gn_b, stride=stride, padding=padding)
    assert out.shape == ref.shape, (out.shape, ref.shape)
    err = float(jnp.max(jnp.abs(out - ref)))
    assert err < 5e-4, err

    # stride > 1 path (polyphase decomposition in the wrapper, stride-1 kernel)
    K2, s2, p2 = 5, 2, 2
    kw2, kb2 = jax.random.split(kw, 2)
    conv_w2 = jax.random.uniform(kw2, (C_out, C_in, K2), jnp.float32, -0.3, 0.3)
    conv_b2 = jax.random.uniform(kb2, (C_out,), jnp.float32, -0.3, 0.3)
    out2 = jax.block_until_ready(
        conv1d_gnorm(x, conv_w2, conv_b2, gn_w, gn_b, stride=s2, padding=p2))
    ref2 = _reference(x, conv_w2, conv_b2, gn_w, gn_b, stride=s2, padding=p2)
    assert out2.shape == ref2.shape, (out2.shape, ref2.shape)
    err2 = float(jnp.max(jnp.abs(out2 - ref2)))
    assert err2 < 5e-4, err2

    print("KERNEL_OK")
</pallas_src>

<mosaic_0001>
module attributes {stable_mosaic.version = 11 : i64} {
  func.func @_conv1d_gnorm_kernel(%arg0: i32, %arg1: memref<1x4x130xbf16, #tpu.memory_space<vmem>>, %arg2: memref<8x12xbf16, #tpu.memory_space<vmem>>, %arg3: memref<8x1xf32, #tpu.memory_space<vmem>>, %arg4: memref<8x1xf32, #tpu.memory_space<vmem>>, %arg5: memref<8x1xf32, #tpu.memory_space<vmem>>, %arg6: memref<1x8x128xf32, #tpu.memory_space<vmem>>, %arg7: memref<12x128xbf16, #tpu.memory_space<vmem>>) attributes {dimension_semantics = [#tpu.dimension_semantics<parallel>], iteration_bounds = array<i64: 2>, scalar_prefetch = 0 : i64, scratch_operands = 1 : i64, tpu.core_type = #tpu.core_type<tc>, window_params = [{transform_indices = @transform_0, window_bounds = array<i64: 1, 4, 130>}, {pipeline_mode = #tpu.pipeline_mode<synchronous>, transform_indices = @transform_1, window_bounds = array<i64: 8, 12>}, {pipeline_mode = #tpu.pipeline_mode<synchronous>, transform_indices = @transform_2, window_bounds = array<i64: 8, 1>}, {pipeline_mode = #tpu.pipeline_mode<synchronous>, transform_indices = @transform_3, window_bounds = array<i64: 8, 1>}, {pipeline_mode = #tpu.pipeline_mode<synchronous>, transform_indices = @transform_4, window_bounds = array<i64: 8, 1>}, {transform_indices = @transform_5, window_bounds = array<i64: 1, 8, 128>}]} {
    %c0 = arith.constant 0 : index
    %c0_0 = arith.constant 0 : index
    %0 = vector.load %arg2[%c0, %c0_0] : memref<8x12xbf16, #tpu.memory_space<vmem>>, vector<8x12xbf16>
    %c0_1 = arith.constant 0 : index
    %c0_2 = arith.constant 0 : index
    %1 = vector.load %arg3[%c0_1, %c0_2] : memref<8x1xf32, #tpu.memory_space<vmem>>, vector<8x1xf32>
    %c0_3 = arith.constant 0 : index
    %c0_4 = arith.constant 0 : index
    %2 = vector.load %arg4[%c0_3, %c0_4] : memref<8x1xf32, #tpu.memory_space<vmem>>, vector<8x1xf32>
    %c0_5 = arith.constant 0 : index
    %c0_6 = arith.constant 0 : index
    %3 = vector.load %arg5[%c0_5, %c0_6] : memref<8x1xf32, #tpu.memory_space<vmem>>, vector<8x1xf32>
    %4 = tpu.iota {dimensions = array<i32: 1>} : vector<8x128xi32>
    %c16_i32 = arith.constant 16 : i32
    %5 = vector.broadcast %c16_i32 : i32 to vector<8x128xi32>
    %6 = arith.cmpi slt, %4, %5 : vector<8x128xi32>
    %7 = arith.extui %6 : vector<8x128xi1> to vector<8x128xi32>
    %8 = arith.sitofp %7 : vector<8x128xi32> to vector<8x128xf32>
    %c0_i32 = arith.constant 0 : i32
    %9 = arith.index_cast %c0_i32 : i32 to index
    %c0_7 = arith.constant 0 : index
    %c0_8 = arith.constant 0 : index
    %10 = vector.load %arg1[%9, %c0_7, %c0_8] : memref<1x4x130xbf16, #tpu.memory_space<vmem>>, vector<1x4x130xbf16>
    %11 = vector.shape_cast %10 : vector<1x4x130xbf16> to vector<4x130xbf16>
    %12 = vector.extract_strided_slice %11 {offsets = [0, 0], sizes = [4, 128], strides = [1, 1]} : vector<4x130xbf16> to vector<4x128xbf16>
    %c0_9 = arith.constant 0 : index
    %c0_10 = arith.constant 0 : index
    %13 = vector.load %arg7[%c0_9, %c0_10] : memref<12x128xbf16, #tpu.memory_space<vmem>>, vector<4x128xbf16>
    tpu.vector_store %arg7[%c0_9, %c0_10], %12 {strides = array<i32>} : memref<12x128xbf16, #tpu.memory_space<vmem>>, vector<4x128xbf16>,
    %14 = vector.extract_strided_slice %11 {offsets = [0, 1], sizes = [4, 128], strides = [1, 1]} : vector<4x130xbf16> to vector<4x128xbf16>
    %c4 = arith.constant 4 : index
    %c0_11 = arith.constant 0 : index
    %15 = vector.load %arg7[%c4, %c0_11] : memref<12x128xbf16, #tpu.memory_space<vmem>>, vector<4x128xbf16>
    tpu.vector_store %arg7[%c4, %c0_11], %14 {strides = array<i32>} : memref<12x128xbf16, #tpu.memory_space<vmem>>, vector<4x128xbf16>,
    %16 = vector.extract_strided_slice %11 {offsets = [0, 2], sizes = [4, 128], strides = [1, 1]} : vector<4x130xbf16> to vector<4x128xbf16>
    %c8 = arith.constant 8 : index
    %c0_12 = arith.constant 0 : index
    %17 = vector.load %arg7[%c8, %c0_12] : memref<12x128xbf16, #tpu.memory_space<vmem>>, vector<4x128xbf16>
    tpu.vector_store %arg7[%c8, %c0_12], %16 {strides = array<i32>} : memref<12x128xbf16, #tpu.memory_space<vmem>>, vector<4x128xbf16>,
    %c0_13 = arith.constant 0 : index
    %c0_14 = arith.constant 0 : index
    %18 = vector.load %arg7[%c0_13, %c0_14] : memref<12x128xbf16, #tpu.memory_space<vmem>>, vector<12x128xbf16>
    %cst = arith.constant dense<0.000000e+00> : vector<8x128xf32>
    %19 = tpu.matmul %0, %18, %cst {dimension_numbers = #tpu.dot_dimension_numbers<[1], [0], [0], [1], [0, 0, 1, 1], [], []>} : vector<8x12xbf16>, vector<12x128xbf16>, vector<8x128xf32> -> vector<8x128xf32>
    %20 = vector.broadcast %1 : vector<8x1xf32> to vector<8x128xf32>
    %21 = arith.addf %19, %20 : vector<8x128xf32>
    %22 = arith.mulf %21, %8 : vector<8x128xf32>
    %23 = vector.shape_cast %22 : vector<8x128xf32> to vector<1x8x128xf32>
    %cst_15 = arith.constant dense<0.000000e+00> : vector<1xf32>
    %24 = vector.multi_reduction <add>, %23, %cst_15 [1, 2] : vector<1x8x128xf32> to vector<1xf32>
    %25 = vector.shape_cast %24 : vector<1xf32> to vector<1x1x1xf32>
    %26 = vector.extract %25[0, 0, 0] : f32 from vector<1x1x1xf32>
    %27 = arith.mulf %22, %22 : vector<8x128xf32>
    %28 = vector.shape_cast %27 : vector<8x128xf32> to vector<1x8x128xf32>
    %cst_16 = arith.constant dense<0.000000e+00> : vector<1xf32>
    %29 = vector.multi_reduction <add>, %28, %cst_16 [1, 2] : vector<1x8x128xf32> to vector<1xf32>
    %30 = vector.shape_cast %29 : vector<1xf32> to vector<1x1x1xf32>
    %31 = vector.extract %30[0, 0, 0] : f32 from vector<1x1x1xf32>
    %cst_17 = arith.constant 1.280000e+02 : f32
    %32 = arith.divf %26, %cst_17 : f32
    %cst_18 = arith.constant 1.280000e+02 : f32
    %33 = arith.divf %31, %cst_18 : f32
    %34 = arith.mulf %32, %32 : f32
    %35 = arith.subf %33, %34 : f32
    %cst_19 = arith.constant 0.000000e+00 : f32
    %36 = arith.maximumf %35, %cst_19 : f32
    %37 = vector.broadcast %32 : f32 to vector<8x128xf32>
    %38 = arith.subf %22, %37 : vector<8x128xf32>
    %cst_20 = arith.constant 9.99999974E-6 : f32
    %39 = arith.addf %36, %cst_20 : f32
    %40 = math.rsqrt %39 : f32
    %41 = vector.broadcast %40 : f32 to vector<8x128xf32>
    %42 = arith.mulf %38, %41 : vector<8x128xf32>
    %43 = vector.broadcast %2 : vector<8x1xf32> to vector<8x128xf32>
    %44 = arith.mulf %42, %43 : vector<8x128xf32>
    %45 = vector.broadcast %3 : vector<8x1xf32> to vector<8x128xf32>
    %46 = arith.addf %44, %45 : vector<8x128xf32>
    %cst_21 = arith.constant 5.000000e-01 : f32
    %47 = vector.broadcast %cst_21 : f32 to vector<8x128xf32>
    %48 = arith.mulf %47, %46 : vector<8x128xf32>
    %cst_22 = arith.constant 0.707106769 : f32
    %49 = vector.broadcast %cst_22 : f32 to vector<8x128xf32>
    %50 = arith.mulf %46, %49 : vector<8x128xf32>
    %51 = math.erf %50 : vector<8x128xf32>
    %cst_23 = arith.constant 1.000000e+00 : f32
    %52 = vector.broadcast %cst_23 : f32 to vector<8x128xf32>
    %53 = arith.addf %52, %51 : vector<8x128xf32>
    %54 = arith.mulf %48, %53 : vector<8x128xf32>
    %55 = arith.index_cast %c0_i32 : i32 to index
    %c0_24 = arith.constant 0 : index
    %c0_25 = arith.constant 0 : index
    %56 = vector.load %arg6[%55, %c0_24, %c0_25] : memref<1x8x128xf32, #tpu.memory_space<vmem>>, vector<1x8x128xf32>
    %57 = vector.shape_cast %56 : vector<1x8x128xf32> to vector<8x128xf32>
    %58 = vector.shape_cast %54 : vector<8x128xf32> to vector<1x8x128xf32>
    tpu.vector_store %arg6[%55, %c0_24, %c0_25], %58 {strides = array<i32>} : memref<1x8x128xf32, #tpu.memory_space<vmem>>, vector<1x8x128xf32>,
    %c1_i32 = arith.constant 1 : i32
    return
  }
  func.func @transform_0(%arg0: i32) -> (i32, i32, i32) {
    %c0_i32 = arith.constant 0 : i32
    %c0_i32_0 = arith.constant 0 : i32
    %c0_i32_1 = arith.constant 0 : i32
    return %arg0, %c0_i32, %c0_i32_0 : i32, i32, i32
  }
  func.func @transform_1(%arg0: i32) -> (i32, i32) {
    %c0_i32 = arith.constant 0 : i32
    %c0_i32_0 = arith.constant 0 : i32
    %c0_i32_1 = arith.constant 0 : i32
    return %c0_i32, %c0_i32_0 : i32, i32
  }
  func.func @transform_2(%arg0: i32) -> (i32, i32) {
    %c0_i32 = arith.constant 0 : i32
    %c0_i32_0 = arith.constant 0 : i32
    %c0_i32_1 = arith.constant 0 : i32
    return %c0_i32, %c0_i32_0 : i32, i32
  }
  func.func @transform_3(%arg0: i32) -> (i32, i32) {
    %c0_i32 = arith.constant 0 : i32
    %c0_i32_0 = arith.constant 0 : i32
    %c0_i32_1 = arith.constant 0 : i32
    return %c0_i32, %c0_i32_0 : i32, i32
  }
  func.func @transform_4(%arg0: i32) -> (i32, i32) {
    %c0_i32 = arith.constant 0 : i32
    %c0_i32_0 = arith.constant 0 : i32
    %c0_i32_1 = arith.constant 0 : i32
    return %c0_i32, %c0_i32_0 : i32, i32
  }
  func.func @transform_5(%arg0: i32) -> (i32, i32, i32) {
    %c0_i32 = arith.constant 0 : i32
    %c0_i32_0 = arith.constant 0 : i32
    %c0_i32_1 = arith.constant 0 : i32
    return %arg0, %c0_i32, %c0_i32_0 : i32, i32, i32
  }
}

</mosaic_0001>

<bundles_post_ra>
// kernel: conv1d_gnorm.1
= control target key start
LH: loop header
LB: loop body
LE: loop exit
PB: predicated region body
PF: predicated region fallthrough
CT: control target
= control target key end

     0   :  { %10 = vsyncpa [#allocation4], 0  ;;  %s735_s0 = inlined_call_operand.vmem [shape: bf16[2,4,130], index: 0, kind: input, shape index: {}]   ;;  %s736_s1 = inlined_call_operand.vmem [shape: bf16[8,12], index: 1, kind: input, shape index: {}]   ;;  %s737_s2 = inlined_call_operand.vmem [shape: f32[8,1], index: 2, kind: input, shape index: {}]   ;;  %s738_s3 = inlined_call_operand.vmem [shape: f32[8,1], index: 3, kind: input, shape index: {}]   ;;  %s739_s4 = inlined_call_operand.vmem [shape: f32[8,1], index: 4, kind: input, shape index: {}]   ;;  %s740_s5 = inlined_call_operand.hbm [shape: f32[2,8,128], index: 5, kind: output, shape index: {}]  }
   0x1   :  { %12 = vsyncpa [#allocation4 + $0x1], 0  ;;  %s636_s18 = smov 0   ;;  %s638_s19 = smov 0  }
   0x2   :  { %s640_s20 = smov 0   ;;  %s642_s21 = smov 0  }
   0x3 LB: > { %s657_s22 = sadd.s32 4294967295, %s596_s21   ;;  %s453_s23 = sadd.s32 4294967294, %s596_s21   ;;  %s596_s21 = sphi %s642_s21, %s746_s21   ;;  %s592_s20 = sphi %s640_s20, %s745_s20   ;;  %s588_s19 = sphi %s638_s19, %s744_s19   ;;  %s584_s18 = sphi %s636_s18, %s743_s18  }
   0x4   : > { %s661_s24 = sadd.s32 1, %s596_s21   ;;  %s135_s25 = sadd.s32 1, %s592_s20 }
   0x5   : > { %s132_s26 = ssub.s32 %s596_s21, %s661_s24  ;;  %p145_p0 = scmp.ne.s32.totalorder %s592_s20, %s588_s19 }
   0x6   : > { %p133_p1 = scmp.eq.s32.totalorder %s132_s26, 0  ;;  %p146_p2 = scmp.eq.s32.totalorder %s657_s22, 1 }
   0x7   : > { %p151_p3 = scmp.ne.s32.totalorder %s588_s19, %s584_s18  ;;  %p152_p4 = scmp.eq.s32.totalorder %s453_s23, 1 }
   0x8   : > { %s672_s27 = scalar_select %p133_p1, %s592_s20, %s135_s25  }
   0x9   : > { %p674_p5 = por %p146_p2, %p145_p0  ;;  %p678_p6 = por %p152_p4, %p151_p3 }
   0xa   : > { %p456_p7 = scmp.ge.s32.totalorder %s596_s21, 1  ;;  %p190_p8 = scmp.lt.s32.totalorder %s596_s21, 3 }
   0xc   : > { %p191_p9 = pnand %p456_p7, %p190_p8 }
   0xd   : > { %p218_p10 = scmp.lt.s32.totalorder (!%p191_p9), %s657_s22, 1  ;;  %s600_s10 = smov (!%p191_p9), 127  }
   0xe   : > { %194 = sbr.rel (%p191_p9) target bundleno = 674 (0x2a2), region = 40  ;;  %s601_s11 = smov (!%p191_p9), 126  }
   0xf   : > { %s215_s14 = sand.u32 (!%p191_p9), 1, %s588_s19   ;;  %s464_s16 = sshll.u32 (!%p191_p9), %s657_s22, 7 }
  0x10   : > { %s457_s15 = sshll.u32 (!%p191_p9), %s215_s14, 3 }
  0x11   : > { %s217_s17 = scalar_lea.vmem (!%p191_p9), [#allocation3], %s457_s15 }
  0x12   : > { %s394_s23 = sshll.u32 (!%p191_p9), %s217_s17, 4  ;;  %s395_s23 = int_to_ptr.vmem [resolvable:$true] %s394_s23 }
  0x13   : > { %v228_v0 = vlaneseq  ;;  %v598_v1 = vmov 1983009808   ;;  %s219_s30 = scalar_select %p218_p10, %s657_s22, 1  ;;  %v599_v7 = vmov 0.0   ;;  %vm602_vm0 = vmmov 0   ;;  %v225_v11 = vld [vmem:[%s737_s2] sm:$0xff] }
  0x14   : > { %v238_v2 = vunpack.c.l.s4 %v598_v1  ;;  %470 = vmatprep.subr.bf16.mxu0 %v599_v7  ;;  %472 = vmatprep.mubr.msk.bf16.mxu0 %vm602_vm0, %v599_v7  ;;  %v603_v13 = vmov 0   ;;  %vm247_vm2 = vcmask 1039360   ;;  %vm261_vm3 = vcmask 1031168   ;;  %v224_v23 = vld [vmem:[%s736_s1] sm:$0xf] }
  0x15   : > { %v241_v3 = vshrl.u32 %v228_v0, 7  ;;  %s467_s6 = sshll.u32 %s219_s30, 2  ;;  %v229_v12 = vand.u32 127, %v228_v0  ;;  %528 = vset.pattern.permute.xlu1 %v603_v13  ;;  %529 = vset.pattern.permute.xlu0 %v603_v13  ;;  %vm281_vm4 = vcmask 1045504   ;;  %vm277_vm5 = vcmask 97280   ;;  %v227_v32 = vld [vmem:[%s739_s4] sm:$0xff] }
  0x16   : > { %v239_v4 = vunpack.c.0.s8 %v238_v2  ;;  %s222_s9 = scalar_lea.vmem %s735_s0, %s467_s6  ;;  %269 = vperm.xlu1 %528, %v225_v11   ;;  %v226_v33 = vld [vmem:[%s738_s3] sm:$0xff] }
  0x17   : > { %v233_v6 = vld [vmem:[%s222_s9] sm:$0xf]  ;;  %vm230_vm1 = vcmp.lt.s32.totalorder %v229_v12, 16 }
  0x18   : > { %v242_v5 = vsub.s32 %v239_v4, %v241_v3  ;;  %v236_v8 = vcombine.low %v233_v6, %v233_v6  ;;  %234 = vst [vmem:[#allocation2] sm:$0x3] %v233_v6  ;;  %v460_v14 = vsel %vm230_vm1, 1.0, %v599_v7 }
  0x1a   : > { %v243_v9 = vrot.slane %v236_v8, %v242_v5  ;;  %v257_v10 = vrot.slane %v233_v6, %v242_v5 }
  0x1c   : > { %244 = vrot.lane.b32.xlu0 %v243_v9, %s600_s10  ;;  %s604_s10 = smov 0.0  }
  0x20   : > { %258 = vrot.lane.b32.xlu0 %v257_v10, %s601_s11 }
  0x8e   : > { %v245_v15 = vpop.permute.xlu0 %244 }
  0x8f   : > { %v246_v16 = vrot.slane %v245_v15, 4 }
  0x91   : > { %v248_v17 = vsel %vm247_vm2, %v245_v15, %v246_v16  ;;  %v270_v24 = vpop.permute.xlu1 %269 }
  0x92   : > { %250 = vst [vmem:[#allocation2] sm:$0xc] %v248_v17  ;;  %v259_v18 = vpop.permute.xlu0 %258 }
  0x93   : > { %v260_v19 = vrot.slane %v259_v18, 4 }
  0x95   : > { %v262_v20 = vsel %vm261_vm3, %v259_v18, %v260_v19 }
  0x96   : > { %264 = vst [vmem:[#allocation2 + $0x4] sm:$0x3] %v262_v20 }
  0x9d   : > { %v531_v21 = vld [vmem:[#allocation2] sm:$0x3f]  }
  0x9e   : > { %v283_v22 = vsel %vm281_vm4, %v531_v21, 0 }
  0x9f   : > { %471 = vmatpush3.bf16.msra.mxu0 %v283_v22 }
  0xa2   : > { %473 = vmatmul.mubr.msk.bf16.vlgmr.msra.gmra.mxu0 %vm277_vm5, %v224_v23 }
 0x162   : > { %v319_v25 = vpop.f32.mrf.mxu0 }
 0x163   : > { %v320_v26 = vadd.f32 %v319_v25, %v270_v24 }
 0x164   : > { %v474_v27 = vpop.f32.mrf.mxu0 }
 0x165   : > { %v325_v28 = vmul.f32 %v460_v14, %v320_v26 }
 0x166   : > { %v322_v29 = vpop.f32.mrf.mxu0 }
 0x167   : > { %326 = vadd.xlane.f32.xlu1 %v325_v28  ;;  %v335_v30 = vmul.f32 %v325_v28, %v325_v28 }
 0x168   : > { %v475_v31 = vpop.f32.mrf.mxu0 }
 0x169   : > { %336 = vadd.xlane.f32.xlu0 %v335_v30 }
 0x178   : > { %370 = vperm.xlu1 %528, %v227_v32  }
 0x17f   : > { %364 = vperm.xlu0 %529, %v226_v33  }
 0x1f0   : > { %v327_v34 = vpop.xlane.xlu1 %326 }
 0x1f1   : > { %v328_v35 = vrot.slane %v327_v34, 4 }
 0x1f2   : > { %v337_v36 = vpop.xlane.xlu0 %336 }
 0x1f3   : > { %v329_v37 = vadd.f32 %v328_v35, %v327_v34  ;;  %v338_v38 = vrot.slane %v337_v36, 4 }
 0x1f4   : > { %v371_v56 = vpop.permute.xlu1 %370 }
 0x1f5   : > { %v330_v39 = vrot.slane %v329_v37, 2  ;;  %v339_v40 = vadd.f32 %v338_v38, %v337_v36 }
 0x1f7   : > { %v340_v41 = vrot.slane %v339_v40, 2  ;;  %v331_v42 = vadd.f32 %v330_v39, %v329_v37 }
 0x1f9   : > { %v332_v43 = vrot.slane %v331_v42, 1  ;;  %v341_v44 = vadd.f32 %v340_v41, %v339_v40 }
 0x1fa   : > { %v365_v53 = vpop.permute.xlu0 %364 }
 0x1fb   : > { %v333_v45 = vadd.f32 %v332_v43, %v331_v42  ;;  %v342_v46 = vrot.slane %v341_v44, 1 }
 0x1fd   : > { %476 = vpush %v333_v45  ;;  %v343_v47 = vadd.f32 %v342_v46, %v341_v44 }
 0x1ff   : > { %478 = vpush %v343_v47 }
 0x22e   : > { %s477_s26 = spop %476 }
 0x22f   : > { %s347_s30 = smul.f32 0.0078125, %s477_s26 }
 0x230   : > { %s479_s6 = spop %478 }
 0x231   : > { %s351_s7 = smul.f32 %s347_s30, %s347_s30  ;;  %v354_v50 = vstv %s347_s30  ;;  %s392_s30 = scalar_lea.hbm %s740_s5, %s464_s16 }
 0x232   : > { %s350_s8 = smul.f32 0.0078125, %s479_s6  ;;  %v355_v51 = vsub.f32 %v325_v28, %v354_v50  ;;  %s381_s6 = scalar_lea.sflag [#allocation4], %s215_s14 }
 0x234   : > { %s352_s9 = ssub.f32 %s350_s8, %s351_s7  ;;  %s536_s7 = scalar_lea.vmem %s395_s23, 128 }
 0x235   : > { %p537_p11 = scmp.ne.s32.totalorder %s395_s23, %s536_s7  ;;  %s605_s8 = smov [#allocation3]  }
 0x236   : > { %s353_s11 = smax.f32 %s604_s10, %s352_s9  ;;  %s540_s9 = sshll.u32 %s605_s8, 4  ;;  %s541_s9 = int_to_ptr.vmem [resolvable:$false] %s540_s9 }
 0x237   : > { %s356_s12 = sadd.f32 1e-05, %s353_s11  ;;  %p538_p12 = pnand %p537_p11, %p674_p5 }
 0x238   : > { %s542_s22 = scalar_lea.vmem %s541_s9, 256  ;;  %p543_p0 = scmp.lt.s32.totalorder %s395_s23, %s541_s9 }
 0x239   : > { %v357_v48 = vstv %s356_s12  ;;  %p539_p13 = pneg %p538_p12  ;;  %p544_p1 = scmp.lt.s32.totalorder %s542_s22, %s536_s7 }
 0x23a   : > { %532 = vrsqrt.f32 %v357_v48 }
 0x23b   : > { %p545_p2 = por %p544_p1, %p543_p0 }
 0x23d   : > { %p546_p3 = pnand %p545_p2, %p539_p13 }
 0x247   : > { %v533_v49 = vpop.eup %532 }
 0x248   : > { %480 = vpush %v533_v49 }
 0x279   : > { %s481_s13 = spop %480 }
 0x27a   : > { %v360_v52 = vstv %s481_s13 }
 0x27b   : > { %v361_v54 = vmul.f32 %v360_v52, %v355_v51 }
 0x27d   : > { %v367_v55 = vmul.f32 %v365_v53, %v361_v54 }
 0x27f   : > { %v373_v57 = vadd.f32 %v371_v56, %v367_v55 }
 0x281   : > { %v375_v58 = vmul.f32 0.70710677, %v373_v57  ;;  %v374_v60 = vmul.f32 0.5, %v373_v57 }
 0x283   : > { %534 = verf.f32 %v375_v58 }
 0x290   : > { %v535_v59 = vpop.eup %534 }
 0x291   : > { %v377_v61 = vadd.f32 1.0, %v535_v59 }
 0x293   : > { %v378_v62 = vmul.f32 %v377_v61, %v374_v60 }
 0x295   : > { %379 = vst [vmem:[%s217_s17] sm:$0xff] %v378_v62 }
 0x296   : > { %549 = shalt.err (!%p546_p3)
}
 0x297   : > { %s550_s10 = scalar_lea.hbm %s392_s30, 128  ;;  %s554_s13 = scalar_lea.hbm %s740_s5, 256 }
 0x298   : > { %p551_p4 = scmp.ne.s32.totalorder %s392_s30, %s550_s10  ;;  %p555_p9 = scmp.lt.s32.totalorder %s392_s30, %s740_s5 }
 0x299   : > { %p556_p10 = scmp.lt.s32.totalorder %s554_s13, %s550_s10 }
 0x29a   : > { %p552_p7 = pnand %p551_p4, %p674_p5 }
 0x29b   : > { %p557_p11 = por %p556_p10, %p555_p9 }
 0x29c   : > { %p553_p8 = pneg %p552_p7 }
 0x29e   : > { %p558_p12 = pnand %p557_p11, %p553_p8 }
 0x2a0   : > { %561 = shalt.err (!%p558_p12)
}
 0x2a1   : > { %482 = dma.vmem_to_hbm [thread:$0]  (%p674_p5), %s395_s23, 128, %s392_s30, %s381_s6  }
 0x2a2 PF: > { %p488_p13 = scmp.ge.s32.totalorder %s596_s21, 2  ;;  %s406_s16 = sand.u32 1, %s584_s18  }
 0x2a3   : > { %s407_s17 = scalar_lea.sflag [#allocation4], %s406_s16 }
 0x2a4   : > { %p485_p0 = pnand %p488_p13, %p678_p6 }
 0x2a6   : > { %p486_p1 = pneg %p485_p0 }
 0x2a8   : > { %579 = dma.done.wait (%p486_p1), %s407_s17, 128  }
 0x2a9   : > { %581 = vsyncadd (%p486_p1), %s407_s17, 4294967168  ;;  %p15_p2 = scmp.ge.s32.totalorder %s661_s24, 4   ;;  %s743_s18 = smov %s588_s19 }
 0x2aa   : > { %s744_s19 = smov %s592_s20  ;;  %s745_s20 = smov %s672_s27 }
 0x2ab   : > { %s746_s21 = smov %s661_s24  ;;  %17 = sbr.rel (!%p15_p2) target bundleno = 3 (0x3), region = 75 }
 0x2b0   :  { %412 = vsyncpa [#allocation4], 1 }
 0x2b1   :  { %414 = vsyncpa [#allocation4 + $0x1], 1 }

</bundles_post_ra>
